<compile_context>
chip_gen: v7x
topology: tpu7x:2x2x1
jax: 0.10.0
libtpu: 0.0.40
codegen_flags: <defaults>
</compile_context>

<pallas_src>
import math

import jax
import jax.numpy as jnp
from jax.experimental import pallas as pl
from jax.experimental.pallas import tpu as pltpu


def graphconv_kernel(adj_t_ref, x_ref, w_ref, b_ref, o_ref):
    # adj_t_ref: (M, N)              pre-transposed adjacency (grid-invariant)
    # x_ref:     (N, TB*F_in)        TB batches stacked along lanes
    # w_ref:     (TB*F_in, TB*F_out) block-diagonal of W^T (grid-invariant)
    # b_ref:     (1, TB*F_out)       tiled bias, f32
    # o_ref:     (M, TB*F_out)
    # Aggregation for all TB batches in one MXU matmul, f32 accumulation.
    agg = jnp.dot(adj_t_ref[...], x_ref[...],
                  preferred_element_type=jnp.float32)          # (M, TB*F_in) f32
    # Linear layer for all TB batches in one MXU matmul (block-diagonal W^T).
    y = jnp.dot(agg.astype(w_ref.dtype), w_ref[...],
                preferred_element_type=jnp.float32)            # (M, TB*F_out) f32
    # Bias add + final cast stay in f32 (cheap VPU filler under the MXU slot).
    o_ref[...] = (y + b_ref[...]).astype(o_ref.dtype)


def _pick_batch_tile(B, F_in, F_out):
    """Choose TB so that TB*F_in and TB*F_out are multiples of 128 (lane-dense
    tiles) while keeping >= 2 grid steps when B allows (v7x megacore)."""
    t_in = 128 // math.gcd(F_in, 128)
    t_out = 128 // math.gcd(F_out, 128)
    t0 = (t_in * t_out) // math.gcd(t_in, t_out)   # lcm
    if B >= 2 * t0:
        tb = t0
        # Amortize per-step overhead further for large B, but cap the lane
        # width (block-diag W waste) and keep >= 2 grid steps.
        while B >= 4 * tb and tb * max(F_in, F_out) < 256:
            tb *= 2
        return tb
    # Small batch: a single step whose blocks equal the full arrays
    # (no (8,128) block constraint, no padding waste).
    return max(B, 1)


def graph_conv(x, adj, weight, bias, *, compute_dtype=jnp.bfloat16):
    """x: (B, N, F_in), adj: (N, M), weight: (F_out, F_in), bias: (F_out,)."""
    B, N, F_in = x.shape
    M = adj.shape[1]
    F_out = weight.shape[0]
    out_dtype = x.dtype

    tb = _pick_batch_tile(B, F_in, F_out)
    grid_b = pl.cdiv(B, tb)
    B_pad = grid_b * tb

    # ---- host-side layout plumbing (done once, outside the kernel) ----
    xp = x if B_pad == B else jnp.pad(x, ((0, B_pad - B), (0, 0), (0, 0)))
    # (B_pad, N, F_in) -> (N, B_pad*F_in): batches stacked along the lane axis.
    x_flat = jnp.transpose(xp, (1, 0, 2)).reshape(N, B_pad * F_in)
    adj_t = adj.T                                               # (M, N)
    # Block-diagonal W^T so the linear step is a single matmul per tile.
    w_blk = jnp.kron(jnp.eye(tb, dtype=weight.dtype), weight.T)  # (tb*F_in, tb*F_out)
    bias_t = jnp.tile(bias.astype(jnp.float32), tb).reshape(1, tb * F_out)

    # bf16 MXU operands (f32 accumulation happens in-kernel); f32 path if requested.
    x_flat = x_flat.astype(compute_dtype)
    adj_t = adj_t.astype(compute_dtype)
    w_blk = w_blk.astype(compute_dtype)

    out_flat = pl.pallas_call(
        graphconv_kernel,
        out_shape=jax.ShapeDtypeStruct((M, B_pad * F_out), out_dtype),
        grid=(grid_b,),
        in_specs=[
            pl.BlockSpec((M, N), lambda i: (0, 0)),                      # adj^T (invariant)
            pl.BlockSpec((N, tb * F_in), lambda i: (0, i)),              # x tile (lane-blocked)
            pl.BlockSpec((tb * F_in, tb * F_out), lambda i: (0, 0)),     # block-diag W^T (invariant)
            pl.BlockSpec((1, tb * F_out), lambda i: (0, 0)),             # bias (invariant)
        ],
        out_specs=pl.BlockSpec((M, tb * F_out), lambda i: (0, i)),
        compiler_params=pltpu.CompilerParams(
            dimension_semantics=("parallel",)),
    )(adj_t, x_flat, w_blk, bias_t)

    # (M, B_pad*F_out) -> (B, M, F_out)
    out = out_flat.reshape(M, B_pad, F_out).transpose(1, 0, 2)[:B]
    return out


if __name__ == "__main__":
    # Small shapes consistent with the module: batch=2, nodes=16, in=32, out=32
    B, N, F_in, F_out = 2, 16, 32, 32

    key = jax.random.PRNGKey(0)
    kx, kadj, kw, kb = jax.random.split(key, 4)

    x = jax.random.normal(kx, (B, N, F_in), dtype=jnp.float32)
    adj = jax.random.normal(kadj, (N, N), dtype=jnp.float32)
    # Deterministic parameter init (nn.Linear-like uniform bound 1/sqrt(F_in))
    bound = 1.0 / jnp.sqrt(jnp.float32(F_in))
    weight = jax.random.uniform(kw, (F_out, F_in), jnp.float32, -bound, bound)
    bias = jax.random.uniform(kb, (F_out,), jnp.float32, -bound, bound)

    M = adj.shape[1]
    # Pure-JAX reference for correctness
    ref = jnp.einsum('bnf,nm->bmf', x, adj) @ weight.T + bias

    # Strict check on the f32 path.
    out_f32 = jax.block_until_ready(
        graph_conv(x, adj, weight, bias, compute_dtype=jnp.float32))
    assert out_f32.shape == (B, M, F_out)
    assert jnp.allclose(out_f32, ref, atol=1e-4, rtol=1e-4), "f32 mismatch vs reference"

    # Default (bf16 MXU inputs, f32 accumulation) — relaxed tolerance.
    out_bf16 = jax.block_until_ready(graph_conv(x, adj, weight, bias))
    assert out_bf16.shape == (B, M, F_out)
    rel_err = jnp.max(jnp.abs(out_bf16 - ref)) / (jnp.max(jnp.abs(ref)) + 1e-6)
    assert rel_err < 5e-2, f"bf16 mismatch vs reference (rel_err={rel_err})"

    print("KERNEL_OK")
</pallas_src>

<mosaic_0001>
module attributes {stable_mosaic.version = 11 : i64} {
  func.func @graphconv_kernel(%arg0: i32, %arg1: memref<16x16xf32, #tpu.memory_space<vmem>>, %arg2: memref<16x64xf32, #tpu.memory_space<vmem>>, %arg3: memref<64x64xf32, #tpu.memory_space<vmem>>, %arg4: memref<1x64xf32, #tpu.memory_space<vmem>>, %arg5: memref<16x64xf32, #tpu.memory_space<vmem>>) attributes {dimension_semantics = [#tpu.dimension_semantics<parallel>], iteration_bounds = array<i64: 1>, scalar_prefetch = 0 : i64, scratch_operands = 0 : i64, tpu.core_type = #tpu.core_type<tc>, window_params = [{pipeline_mode = #tpu.pipeline_mode<synchronous>, transform_indices = @transform_0, window_bounds = array<i64: 16, 16>}, {transform_indices = @transform_1, window_bounds = array<i64: 16, 64>}, {pipeline_mode = #tpu.pipeline_mode<synchronous>, transform_indices = @transform_2, window_bounds = array<i64: 64, 64>}, {pipeline_mode = #tpu.pipeline_mode<synchronous>, transform_indices = @transform_3, window_bounds = array<i64: 1, 64>}, {transform_indices = @transform_4, window_bounds = array<i64: 16, 64>}]} {
    %c0 = arith.constant 0 : index
    %c0_0 = arith.constant 0 : index
    %0 = vector.load %arg1[%c0, %c0_0] : memref<16x16xf32, #tpu.memory_space<vmem>>, vector<16x16xf32>
    %c0_1 = arith.constant 0 : index
    %c0_2 = arith.constant 0 : index
    %1 = vector.load %arg2[%c0_1, %c0_2] : memref<16x64xf32, #tpu.memory_space<vmem>>, vector<16x64xf32>
    %cst = arith.constant dense<0.000000e+00> : vector<16x64xf32>
    %2 = tpu.matmul %0, %1, %cst {dimension_numbers = #tpu.dot_dimension_numbers<[1], [0], [0], [1], [0, 0, 1, 1], [], []>} : vector<16x16xf32>, vector<16x64xf32>, vector<16x64xf32> -> vector<16x64xf32>
    %c0_3 = arith.constant 0 : index
    %c0_4 = arith.constant 0 : index
    %3 = vector.load %arg3[%c0_3, %c0_4] : memref<64x64xf32, #tpu.memory_space<vmem>>, vector<64x64xf32>
    %cst_5 = arith.constant dense<0.000000e+00> : vector<16x64xf32>
    %4 = tpu.matmul %2, %3, %cst_5 {dimension_numbers = #tpu.dot_dimension_numbers<[1], [0], [0], [1], [0, 0, 1, 1], [], []>} : vector<16x64xf32>, vector<64x64xf32>, vector<16x64xf32> -> vector<16x64xf32>
    %c0_6 = arith.constant 0 : index
    %c0_7 = arith.constant 0 : index
    %5 = vector.load %arg4[%c0_6, %c0_7] : memref<1x64xf32, #tpu.memory_space<vmem>>, vector<1x64xf32>
    %6 = vector.broadcast %5 : vector<1x64xf32> to vector<16x64xf32>
    %7 = arith.addf %4, %6 : vector<16x64xf32>
    %c0_8 = arith.constant 0 : index
    %c0_9 = arith.constant 0 : index
    %8 = vector.load %arg5[%c0_8, %c0_9] : memref<16x64xf32, #tpu.memory_space<vmem>>, vector<16x64xf32>
    tpu.vector_store %arg5[%c0_8, %c0_9], %7 {strides = array<i32>} : memref<16x64xf32, #tpu.memory_space<vmem>>, vector<16x64xf32>,
    return
  }
  func.func @transform_0(%arg0: i32) -> (i32, i32) {
    %c0_i32 = arith.constant 0 : i32
    %c0_i32_0 = arith.constant 0 : i32
    %c0_i32_1 = arith.constant 0 : i32
    return %c0_i32, %c0_i32_0 : i32, i32
  }
  func.func @transform_1(%arg0: i32) -> (i32, i32) {
    %c0_i32 = arith.constant 0 : i32
    %c0_i32_0 = arith.constant 0 : i32
    return %c0_i32, %arg0 : i32, i32
  }
  func.func @transform_2(%arg0: i32) -> (i32, i32) {
    %c0_i32 = arith.constant 0 : i32
    %c0_i32_0 = arith.constant 0 : i32
    %c0_i32_1 = arith.constant 0 : i32
    return %c0_i32, %c0_i32_0 : i32, i32
  }
  func.func @transform_3(%arg0: i32) -> (i32, i32) {
    %c0_i32 = arith.constant 0 : i32
    %c0_i32_0 = arith.constant 0 : i32
    %c0_i32_1 = arith.constant 0 : i32
    return %c0_i32, %c0_i32_0 : i32, i32
  }
  func.func @transform_4(%arg0: i32) -> (i32, i32) {
    %c0_i32 = arith.constant 0 : i32
    %c0_i32_0 = arith.constant 0 : i32
    return %c0_i32, %arg0 : i32, i32
  }
}

</mosaic_0001>

<bundles_post_ra>
// kernel: tpu_custom_call.1
= control target key start
LH: loop header
LB: loop body
LE: loop exit
PB: predicated region body
PF: predicated region fallthrough
CT: control target
= control target key end

     0   :  { %9 = vsyncpa [#allocation3], 0  ;;  %s530_s0 = inlined_call_operand.hbm [shape: f32[16,16], index: 0, kind: input, shape index: {}]   ;;  %s531_s1 = inlined_call_operand.hbm [shape: f32[16,64], index: 1, kind: input, shape index: {}]   ;;  %s532_s2 = inlined_call_operand.hbm [shape: f32[64,64], index: 2, kind: input, shape index: {}]   ;;  %s533_s3 = inlined_call_operand.vmem [shape: f32[1,64], index: 3, kind: input, shape index: {}]   ;;  %s534_s4 = inlined_call_operand.hbm [shape: f32[16,64], index: 4, kind: output, shape index: {}]  }
   0x1   :  { %10 = vsyncpa [#allocation6], 0 }
   0x2   :  { %11 = vsyncpa [#allocation4], 0  ;;  %s427_s15 = smov [#allocation5]   ;;  %s428_s17 = smov [#allocation2]  }
   0x3   :  { %s29_s16 = sshll.u32 %s427_s15, 4  ;;  %s17_s18 = sshll.u32 %s428_s17, 4  ;;  %s30_s16 = int_to_ptr.vmem [resolvable:$true] %s29_s16  ;;  %s458_s18 = int_to_ptr.vmem [resolvable:$true] %s17_s18 }
   0x4   :  { %s333_s21 = scalar_lea.hbm %s531_s1, 256 }
   0x5   :  { %p334_p0 = scmp.ne.s32.totalorder %s531_s1, %s333_s21  ;;  %p337_p1 = scmp.lt.u32.totalorder %s333_s21, %s531_s1 }
   0x7   :  { %p339_p2 = pnand %p337_p1, %p334_p0 }
   0x9   :  { %342 = shalt.err (!%p339_p2)
}
   0xa   :  { %s343_s26 = scalar_lea.vmem %s30_s16, 256  ;;  %p348_p4 = scmp.lt.s32.totalorder %s30_s16, %s30_s16 }
   0xb   :  { %p344_p3 = scmp.ne.s32.totalorder %s30_s16, %s343_s26  ;;  %p349_p5 = scmp.lt.s32.totalorder %s343_s26, %s343_s26 }
   0xd   :  { %p350_p6 = por %p349_p5, %p348_p4 }
   0xf   :  { %p351_p7 = pnand %p350_p6, %p344_p3 }
  0x11   :  { %354 = shalt.err (!%p351_p7)
}
  0x12   :  { %s429_s27 = smov 128   ;;  %s430_s28 = smov 8  }
  0x13   :  { %35 = dma.hbm_to_vmem [thread:$0]  %s531_s1, 256, %s30_s16, [#allocation6], %s429_s27, %s429_s27, %s430_s28  }
  0x14   :  { %s355_s7 = scalar_lea.hbm %s530_s0, 256 }
  0x15   :  { %p356_p8 = scmp.ne.s32.totalorder %s530_s0, %s355_s7  ;;  %p359_p9 = scmp.lt.u32.totalorder %s355_s7, %s530_s0 }
  0x17   :  { %p361_p10 = pnand %p359_p9, %p356_p8 }
  0x19   :  { %364 = shalt.err (!%p361_p10)
}
  0x1a   :  { %s365_s12 = scalar_lea.vmem %s458_s18, 256  ;;  %p370_p12 = scmp.lt.s32.totalorder %s458_s18, %s458_s18 }
  0x1b   :  { %p366_p11 = scmp.ne.s32.totalorder %s458_s18, %s365_s12  ;;  %p371_p13 = scmp.lt.s32.totalorder %s365_s12, %s365_s12 }
  0x1d   :  { %p372_p0 = por %p371_p13, %p370_p12 }
  0x1f   :  { %p373_p1 = pnand %p372_p0, %p366_p11 }
  0x21   :  { %376 = shalt.err (!%p373_p1)
}
  0x22   :  { %23 = dma.hbm_to_vmem [thread:$0]  %s530_s0, 256, %s458_s18, [#allocation3], %s429_s27, %s429_s27, %s430_s28  }
  0x23   :  { %s431_s14 = smov [#allocation7]   ;;  %s377_s19 = scalar_lea.hbm %s532_s2, 1024 }
  0x24   :  { %s41_s15 = sshll.u32 %s431_s14, 4  ;;  %p378_p2 = scmp.ne.s32.totalorder %s532_s2, %s377_s19  ;;  %s42_s15 = int_to_ptr.vmem [resolvable:$true] %s41_s15 }
  0x25   :  { %p381_p3 = scmp.lt.u32.totalorder %s377_s19, %s532_s2 }
  0x27   :  { %p383_p4 = pnand %p381_p3, %p378_p2 }
  0x29   :  { %386 = shalt.err (!%p383_p4)
}
  0x2a   :  { %s387_s24 = scalar_lea.vmem %s42_s15, 1024  ;;  %p392_p6 = scmp.lt.s32.totalorder %s42_s15, %s42_s15 }
  0x2b   :  { %p388_p5 = scmp.ne.s32.totalorder %s42_s15, %s387_s24  ;;  %p393_p7 = scmp.lt.s32.totalorder %s387_s24, %s387_s24 }
  0x2d   :  { %p394_p8 = por %p393_p7, %p392_p6 }
  0x2f   :  { %p395_p9 = pnand %p394_p8, %p388_p5 }
  0x31   :  { %398 = shalt.err (!%p395_p9)
}
  0x32   :  { %47 = dma.hbm_to_vmem [thread:$0]  %s532_s2, 1024, %s42_s15, [#allocation6], %s429_s27, %s429_s27, %s430_s28  }
  0x33   :  { %421 = dma.done.wait [#allocation3], 256  }
  0x34   :  { %422 = vsyncadd [#allocation3], 4294967040 }
  0x35   :  { %423 = dma.done.wait [#allocation6], 1280  }
  0x36   :  { %424 = vsyncadd [#allocation6], 4294966016  ;;  %vm63_vm0 = vcmask 130048   ;;  %v61_v0 = vld [vmem:[#allocation5] sm:$0xff]  ;;  %v62_v1 = vld [vmem:[#allocation5 + $0x8] sm:$0xff]  ;;  %vm160_vm1 = vcmask 523264  }
  0x37   :  { %v59_v2 = vld [vmem:[#allocation2] sm:$0xff]  ;;  %v307_v3 = vpack.c.bf16 %v62_v1, %v61_v0  ;;  %v146_v5 = vld [vmem:[#allocation7 + $0x8] sm:$0xff]  ;;  %v147_v7 = vld [vmem:[#allocation7 + $0x10] sm:$0xff]  ;;  %s432_s26 = smov [#allocation8]  }
  0x38   :  { %285 = vmatprep.mubr.msk.f32.mxu0 %vm63_vm0, %v59_v2  ;;  %v145_v4 = vld [vmem:[#allocation7] sm:$0xff]  ;;  %v148_v8 = vld [vmem:[#allocation7 + $0x18] sm:$0xff]  ;;  %v150_v11 = vld [vmem:[#allocation7 + $0x28] sm:$0xff]  ;;  %s249_s29 = sshll.u32 %s432_s26, 4  ;;  %s250_s29 = int_to_ptr.vmem [resolvable:$true] %s249_s29 }
  0x39   :  { %v311_v6 = vpack.c.bf16 %v146_v5, %v145_v4  ;;  %308 = vmatprep.subr.bf16.mxu0 %v307_v3  ;;  %v315_v9 = vpack.c.bf16 %v148_v8, %v147_v7  ;;  %v149_v10 = vld [vmem:[#allocation7 + $0x20] sm:$0xff]  ;;  %v60_v12 = vld [vmem:[#allocation2 + $0x8] sm:$0xff]  ;;  %v151_v14 = vld [vmem:[#allocation7 + $0x30] sm:$0xff]  ;;  %s399_s30 = scalar_lea.vmem %s250_s29, 256  ;;  %p404_p11 = scmp.lt.s32.totalorder %s250_s29, %s250_s29 }
  0x3a   :  { %310 = vmatpush3.bf16.msra.mxu0 %v307_v3  ;;  %v319_v13 = vpack.c.bf16 %v150_v11, %v149_v10  ;;  %v152_v15 = vld [vmem:[#allocation7 + $0x38] sm:$0xff]  ;;  %v264_v19 = vld [vmem:[%s533_s3] ss:$0 sm:$0xff]  ;;  %p400_p10 = scmp.ne.s32.totalorder %s250_s29, %s399_s30  ;;  %p405_p12 = scmp.lt.s32.totalorder %s399_s30, %s399_s30 }
  0x3b   :  { %312 = vmatprep.subr.bf16.mxu1 %v311_v6  ;;  %v323_v16 = vpack.c.bf16 %v152_v15, %v151_v14 }
  0x3c   :  { %314 = vmatpush3.bf16.msra.mxu1 %v311_v6  ;;  %p406_p13 = por %p405_p12, %p404_p11 }
  0x3d   :  { %316 = vmatprep.subr.bf16.mxu1 %v315_v9  ;;  %286 = vmatmul.mubr.msk.f32.vlgmr.msra.gmra.mrb[0].mxu0 %vm63_vm0, %v60_v12 }
  0x3e   :  { %p407_p0 = pnand %p406_p13, %p400_p10 }
  0x40   :  { %318 = vmatpush3.bf16.msra.mxu1 %v315_v9 }
  0x41   :  { %320 = vmatprep.subr.bf16.mxu1 %v319_v13 }
  0x44   :  { %322 = vmatpush3.bf16.msra.mxu1 %v319_v13 }
  0x45   :  { %324 = vmatprep.subr.bf16.mxu1 %v323_v16 }
  0x48   :  { %326 = vmatpush3.bf16.msra.mxu1 %v323_v16 }
 0x110   :  { %v287_v17 = vpop.f32.mrb[0].mxu0 }
 0x111   :  { %v136_v18 = vpop.f32.mrb[1].mxu0 }
 0x112   :  { %304 = vmatprep.mubr.msk.f32.mxu1 %vm160_vm1, %v136_v18 }
 0x113   :  { %305 = vmatmul.mubr.msk.f32.vlgmr.msra.gmra.mrb[0].mxu1 %vm160_vm1, %v287_v17 }
 0x1e6   :  { %v306_v20 = vpop.f32.mrb[0].mxu1 }
 0x1e7   :  { %v239_v21 = vadd.f32 %v306_v20, %v264_v19  ;;  %v233_v22 = vpop.f32.mrb[1].mxu1 }
 0x1e8   :  { %v234_v23 = vadd.f32 %v264_v19, %v233_v22 }
 0x1e9   :  { %243 = vst.msk [vmem:[#allocation8 + $0x8] sm:$0xff] %vm160_vm1, %v239_v21 }
 0x1ea   :  { %242 = vst.msk [vmem:[#allocation8] sm:$0xff] %vm160_vm1, %v234_v23 }
 0x1eb   :  { %410 = shalt.err (!%p407_p0)
}
 0x1ec   :  { %s411_s3 = scalar_lea.hbm %s534_s4, 256 }
 0x1ed   :  { %p412_p1 = scmp.ne.s32.totalorder %s534_s4, %s411_s3  ;;  %p415_p2 = scmp.lt.u32.totalorder %s411_s3, %s534_s4 }
 0x1ef   :  { %p417_p3 = pnand %p415_p2, %p412_p1 }
 0x1f1   :  { %420 = shalt.err (!%p417_p3)
}
 0x1f2   :  { %255 = dma.vmem_to_hbm [thread:$0]  %s250_s29, 256, %s534_s4, [#allocation4], %s429_s27, %s429_s27, %s430_s28  }
 0x1f3   :  { %425 = dma.done.wait [#allocation4], 256  }
 0x1f4   :  { %426 = vsyncadd [#allocation4], 4294967040 }
 0x1f5   :  { %259 = vsyncpa [#allocation3], 1 }
 0x1f6   :  { %260 = vsyncpa [#allocation6], 1 }
 0x1f7   :  { %261 = vsyncpa [#allocation4], 1 }

</bundles_post_ra>
